<compile_context>
chip_gen: v6e
topology: v6e:2x2x1
jax: 0.10.0
libtpu: 0.0.40
codegen_flags: <defaults>
</compile_context>

<pallas_src>
import functools

import jax
import jax.numpy as jnp
import numpy as np
from jax import lax
from jax.experimental import pallas as pl
from jax.experimental.pallas import tpu as pltpu

BN_EPS = 1e-5
_PAD = 8   # sublane-aligned top padding for the H-padded intermediate scratch


# ------------------------------ Pallas kernel ------------------------------ #

def conv_block_kernel(xp_ref, w1d_ref, w2d_ref, par_ref, proj_ref,
                      out_ref, y1p_ref, *, eps):
    """Fused conv3x3+BN+ReLU -> conv3x3+BN+ReLU in folded-W (lane-dense) layout.

    xp_ref  : (N, H+2, W*Cin)      f32   input, zero-padded along H only
    w1d_ref : (3, W*Cin, W*C)      bf16  per-kh dense tap matrix (kw + W-pad folded)
    w2d_ref : (3, W*C,  W*C)       bf16
    par_ref : (6, W*C)             f32   [b1, g1, be1, b2, g2, be2], tiled over W
    proj_ref: (W*C, W*C)           f32   channel-avg projector (includes 1/(N*H*W))
    out_ref : (N*H, W*C)           f32   layer-2 output (lane-dense)
    y1p_ref : (N, H+2*_PAD, W*C)   f32   scratch: H-padded intermediate
    """
    N, Hp, WCin = xp_ref.shape
    H = Hp - 2
    R = N * H
    L = w1d_ref.shape[-1]                      # W * C  (== 128 at the toy shape)

    proj = proj_ref[...]                       # (L, L), loaded once

    def bias_bn_relu(acc, row0):
        """conv bias + training-mode BatchNorm (stats over N,H,W) + ReLU."""
        bias = par_ref[pl.ds(row0 + 0, 1), :]
        gamma = par_ref[pl.ds(row0 + 1, 1), :]
        beta = par_ref[pl.ds(row0 + 2, 1), :]
        y = acc + bias                                            # (R, L) f32
        # Per-channel mean / E[y^2]: reduce over rows, then average the W
        # same-channel lane groups with one small matmul against `proj`.
        mean = jnp.dot(jnp.sum(y, axis=0, keepdims=True), proj,
                       preferred_element_type=jnp.float32)        # (1, L)
        ex2 = jnp.dot(jnp.sum(y * y, axis=0, keepdims=True), proj,
                      preferred_element_type=jnp.float32)
        var = ex2 - mean * mean                                   # biased variance
        y = (y - mean) * lax.rsqrt(var + eps) * gamma + beta
        return jnp.maximum(y, 0.0)

    # ---- layer 1: conv3x3 as 3 flat MXU matmuls + bias + BN + ReLU ----
    acc1 = jnp.zeros((R, L), jnp.float32)
    for kh in range(3):                                           # static unroll
        lhs = xp_ref[:, pl.ds(kh, H), :].reshape(R, WCin)         # (R, W*Cin) f32
        acc1 = acc1 + jnp.dot(lhs.astype(jnp.bfloat16), w1d_ref[kh],
                              preferred_element_type=jnp.float32)
    y1 = bias_bn_relu(acc1, 0)                                    # (R, L) f32

    # H-pad the intermediate into VMEM scratch: payload stored at the
    # sublane-aligned row offset _PAD, surrounding rows stay zero.
    y1p_ref[...] = jnp.zeros_like(y1p_ref)
    y1p_ref[:, pl.ds(_PAD, H), :] = y1.reshape(N, H, L)

    # ---- layer 2 ----
    acc2 = jnp.zeros((R, L), jnp.float32)
    for kh in range(3):
        lhs = y1p_ref[:, pl.ds(_PAD - 1 + kh, H), :].reshape(R, L)
        acc2 = acc2 + jnp.dot(lhs.astype(jnp.bfloat16), w2d_ref[kh],
                              preferred_element_type=jnp.float32)
    out_ref[...] = bias_bn_relu(acc2, 3)                          # one dense store


# ------------------------------- JAX wrapper ------------------------------- #

def _fold_conv_weights(w_hwio, W):
    """(3, 3, Cin, Cout) -> (3, W*Cin, W*Cout) dense per-kh tap matrices.

    Column (w_out*Cout + co) of matrix kh gathers input lane ((w_out+kw-1)*Cin + ci)
    with weight w[kh, kw, ci, co]; taps falling outside [0, W) are dropped, which
    is exactly the zero 'same' padding along W."""
    _, _, cin, cout = w_hwio.shape
    m = np.zeros((3, W, W), np.float32)           # m[kw, w_out, w_in]
    for kw in range(3):
        for wo in range(W):
            wi = wo + kw - 1
            if 0 <= wi < W:
                m[kw, wo, wi] = 1.0
    d = jnp.einsum("koi,hkcf->hicof", jnp.asarray(m), w_hwio)  # (3, W, Cin, W, Cout)
    return d.reshape(3, W * cin, W * cout)


def conv_block_apply(x_nchw, params, *, eps=BN_EPS):
    N, Cin, H, W = x_nchw.shape
    C = params["w1"].shape[-1]                    # out_c (both convs emit out_c)
    L = W * C

    # NCHW -> NHWC, zero-pad H by 1 (W padding is folded into the tap weights),
    # then fold W into the lane dim: (N, H+2, W*Cin).
    x = jnp.transpose(x_nchw, (0, 2, 3, 1)).astype(jnp.float32)
    xp = jnp.pad(x, ((0, 0), (1, 1), (0, 0), (0, 0))).reshape(N, H + 2, W * Cin)

    w1d = _fold_conv_weights(params["w1"], W).astype(jnp.bfloat16)  # (3, W*Cin, L)
    w2d = _fold_conv_weights(params["w2"], W).astype(jnp.bfloat16)  # (3, L, L)

    # All BN/bias parameters as one lane-dense (6, W*C) f32 block.
    par = jnp.stack([jnp.tile(params["b1"], W), jnp.tile(params["g1"], W),
                     jnp.tile(params["be1"], W), jnp.tile(params["b2"], W),
                     jnp.tile(params["g2"], W), jnp.tile(params["be2"], W)]
                    ).astype(jnp.float32)

    # Channel-averaging projector: P[l, l'] = 1/(N*H*W) if l % C == l' % C.
    ch = np.arange(L) % C
    proj = jnp.asarray((ch[:, None] == ch[None, :]).astype(np.float32)
                       / float(N * H * W))

    out2d = pl.pallas_call(
        functools.partial(conv_block_kernel, eps=eps),
        out_shape=jax.ShapeDtypeStruct((N * H, L), jnp.float32),
        in_specs=[pl.BlockSpec(memory_space=pltpu.MemorySpace.VMEM)] * 5,
        out_specs=pl.BlockSpec(memory_space=pltpu.MemorySpace.VMEM),
        scratch_shapes=[pltpu.VMEM((N, H + 2 * _PAD, L), jnp.float32)],
    )(xp, w1d, w2d, par, proj)

    # (N*H, W*C) -> NHWC -> NCHW (wrapper-side layout plumbing only)
    return jnp.transpose(out2d.reshape(N, H, W, C), (0, 3, 1, 2))


@jax.jit
def conv_block_forward(x_nchw, params):
    """conv_block.forward: NCHW in, NCHW out."""
    return conv_block_apply(x_nchw, params)


def init_params(key, in_c, out_c):
    """Deterministic synthetic parameters. Conv weights stored as HWIO
    (PyTorch's OIHW weight would be w_torch.transpose(2, 3, 1, 0))."""
    ks = jax.random.split(key, 8)
    rnd = lambda k, shape, s=0.1: (s * jax.random.normal(k, shape)).astype(jnp.float32)
    return {
        "w1": rnd(ks[0], (3, 3, in_c, out_c)),
        "b1": rnd(ks[1], (out_c,)),
        "g1": 1.0 + rnd(ks[2], (out_c,)),
        "be1": rnd(ks[3], (out_c,)),
        "w2": rnd(ks[4], (3, 3, out_c, out_c)),
        "b2": rnd(ks[5], (out_c,)),
        "g2": 1.0 + rnd(ks[6], (out_c,)),
        "be2": rnd(ks[7], (out_c,)),
    }


def _reference(x_nchw, params):
    """Pure-JAX f32 reference of the same forward (correctness check)."""
    def layer(x, w, b, g, be):
        y = lax.conv_general_dilated(
            x, w, window_strides=(1, 1), padding=((1, 1), (1, 1)),
            dimension_numbers=("NHWC", "HWIO", "NHWC"))
        y = y + b
        mean = jnp.mean(y, axis=(0, 1, 2), keepdims=True)
        var = jnp.var(y, axis=(0, 1, 2), keepdims=True)
        y = (y - mean) * lax.rsqrt(var + BN_EPS) * g + be
        return jnp.maximum(y, 0.0)

    x = jnp.transpose(x_nchw, (0, 2, 3, 1))
    x = layer(x, params["w1"], params["b1"], params["g1"], params["be1"])
    x = layer(x, params["w2"], params["b2"], params["g2"], params["be2"])
    return jnp.transpose(x, (0, 3, 1, 2))


if __name__ == "__main__":
    key = jax.random.PRNGKey(0)
    kx, kp = jax.random.split(key)

    # conv_block(in_c=4, out_c=8) on a (2, 4, 16, 16) NCHW input
    # (=> folded lane width W*out_c = 128).
    x = jax.random.normal(kx, (2, 4, 16, 16), dtype=jnp.float32)
    params = init_params(kp, in_c=4, out_c=8)

    y = jax.block_until_ready(conv_block_forward(x, params))
    assert y.shape == (2, 8, 16, 16), y.shape

    y_ref = _reference(x, params)
    # bf16 MXU inputs (f32 accumulation / epilogue) -> loosened tolerance.
    np.testing.assert_allclose(np.asarray(y), np.asarray(y_ref),
                               atol=2e-2, rtol=2e-2)
    print("KERNEL_OK")
</pallas_src>

<mosaic_0001>
module attributes {stable_mosaic.version = 11 : i64} {
  func.func @conv_block_kernel(%arg0: memref<2x18x64xf32, #tpu.memory_space<vmem>>, %arg1: memref<3x64x128xbf16, #tpu.memory_space<vmem>>, %arg2: memref<3x128x128xbf16, #tpu.memory_space<vmem>>, %arg3: memref<6x128xf32, #tpu.memory_space<vmem>>, %arg4: memref<128x128xf32, #tpu.memory_space<vmem>>, %arg5: memref<32x128xf32, #tpu.memory_space<vmem>>, %arg6: memref<2x32x128xf32, #tpu.memory_space<vmem>>) attributes {dimension_semantics = [], scalar_prefetch = 0 : i64, scratch_operands = 1 : i64, tpu.core_type = #tpu.core_type<tc>} {
    %c0 = arith.constant 0 : index
    %c0_0 = arith.constant 0 : index
    %0 = vector.load %arg4[%c0, %c0_0] : memref<128x128xf32, #tpu.memory_space<vmem>>, vector<128x128xf32>
    %cst = arith.constant 0.000000e+00 : f32
    %1 = vector.broadcast %cst : f32 to vector<32x128xf32>
    %c0_1 = arith.constant 0 : index
    %c0_2 = arith.constant 0 : index
    %c0_3 = arith.constant 0 : index
    %2 = vector.load %arg0[%c0_1, %c0_2, %c0_3] : memref<2x18x64xf32, #tpu.memory_space<vmem>>, vector<2x16x64xf32>
    %3 = vector.shape_cast %2 : vector<2x16x64xf32> to vector<32x64xf32>
    %4 = arith.truncf %3 : vector<32x64xf32> to vector<32x64xbf16>
    %c0_4 = arith.constant 0 : index
    %c0_5 = arith.constant 0 : index
    %c0_6 = arith.constant 0 : index
    %5 = vector.load %arg1[%c0_4, %c0_5, %c0_6] : memref<3x64x128xbf16, #tpu.memory_space<vmem>>, vector<1x64x128xbf16>
    %6 = vector.shape_cast %5 : vector<1x64x128xbf16> to vector<64x128xbf16>
    %cst_7 = arith.constant dense<0.000000e+00> : vector<32x128xf32>
    %7 = tpu.matmul %4, %6, %cst_7 {dimension_numbers = #tpu.dot_dimension_numbers<[1], [0], [0], [1], [0, 0, 1, 1], [], []>} : vector<32x64xbf16>, vector<64x128xbf16>, vector<32x128xf32> -> vector<32x128xf32>
    %8 = arith.addf %1, %7 : vector<32x128xf32>
    %c0_8 = arith.constant 0 : index
    %c1 = arith.constant 1 : index
    %c0_9 = arith.constant 0 : index
    %9 = vector.load %arg0[%c0_8, %c1, %c0_9] : memref<2x18x64xf32, #tpu.memory_space<vmem>>, vector<2x16x64xf32>
    %10 = vector.shape_cast %9 : vector<2x16x64xf32> to vector<32x64xf32>
    %11 = arith.truncf %10 : vector<32x64xf32> to vector<32x64xbf16>
    %c1_10 = arith.constant 1 : index
    %c0_11 = arith.constant 0 : index
    %c0_12 = arith.constant 0 : index
    %12 = vector.load %arg1[%c1_10, %c0_11, %c0_12] : memref<3x64x128xbf16, #tpu.memory_space<vmem>>, vector<1x64x128xbf16>
    %13 = vector.shape_cast %12 : vector<1x64x128xbf16> to vector<64x128xbf16>
    %cst_13 = arith.constant dense<0.000000e+00> : vector<32x128xf32>
    %14 = tpu.matmul %11, %13, %cst_13 {dimension_numbers = #tpu.dot_dimension_numbers<[1], [0], [0], [1], [0, 0, 1, 1], [], []>} : vector<32x64xbf16>, vector<64x128xbf16>, vector<32x128xf32> -> vector<32x128xf32>
    %15 = arith.addf %8, %14 : vector<32x128xf32>
    %c0_14 = arith.constant 0 : index
    %c2 = arith.constant 2 : index
    %c0_15 = arith.constant 0 : index
    %16 = vector.load %arg0[%c0_14, %c2, %c0_15] : memref<2x18x64xf32, #tpu.memory_space<vmem>>, vector<2x16x64xf32>
    %17 = vector.shape_cast %16 : vector<2x16x64xf32> to vector<32x64xf32>
    %18 = arith.truncf %17 : vector<32x64xf32> to vector<32x64xbf16>
    %c2_16 = arith.constant 2 : index
    %c0_17 = arith.constant 0 : index
    %c0_18 = arith.constant 0 : index
    %19 = vector.load %arg1[%c2_16, %c0_17, %c0_18] : memref<3x64x128xbf16, #tpu.memory_space<vmem>>, vector<1x64x128xbf16>
    %20 = vector.shape_cast %19 : vector<1x64x128xbf16> to vector<64x128xbf16>
    %cst_19 = arith.constant dense<0.000000e+00> : vector<32x128xf32>
    %21 = tpu.matmul %18, %20, %cst_19 {dimension_numbers = #tpu.dot_dimension_numbers<[1], [0], [0], [1], [0, 0, 1, 1], [], []>} : vector<32x64xbf16>, vector<64x128xbf16>, vector<32x128xf32> -> vector<32x128xf32>
    %22 = arith.addf %15, %21 : vector<32x128xf32>
    %c0_20 = arith.constant 0 : index
    %c0_21 = arith.constant 0 : index
    %23 = vector.load %arg3[%c0_20, %c0_21] : memref<6x128xf32, #tpu.memory_space<vmem>>, vector<1x128xf32>
    %c1_22 = arith.constant 1 : index
    %c0_23 = arith.constant 0 : index
    %24 = vector.load %arg3[%c1_22, %c0_23] : memref<6x128xf32, #tpu.memory_space<vmem>>, vector<1x128xf32>
    %c2_24 = arith.constant 2 : index
    %c0_25 = arith.constant 0 : index
    %25 = vector.load %arg3[%c2_24, %c0_25] : memref<6x128xf32, #tpu.memory_space<vmem>>, vector<1x128xf32>
    %26 = vector.broadcast %23 : vector<1x128xf32> to vector<32x128xf32>
    %27 = arith.addf %22, %26 : vector<32x128xf32>
    %cst_26 = arith.constant dense<0.000000e+00> : vector<128xf32>
    %28 = vector.multi_reduction <add>, %27, %cst_26 [0] : vector<32x128xf32> to vector<128xf32>
    %29 = vector.shape_cast %28 : vector<128xf32> to vector<1x128xf32>
    %cst_27 = arith.constant dense<0.000000e+00> : vector<1x128xf32>
    %30 = tpu.matmul %29, %0, %cst_27 {dimension_numbers = #tpu.dot_dimension_numbers<[1], [0], [0], [1], [0, 0, 1, 1], [], []>} : vector<1x128xf32>, vector<128x128xf32>, vector<1x128xf32> -> vector<1x128xf32>
    %31 = arith.mulf %27, %27 : vector<32x128xf32>
    %cst_28 = arith.constant dense<0.000000e+00> : vector<128xf32>
    %32 = vector.multi_reduction <add>, %31, %cst_28 [0] : vector<32x128xf32> to vector<128xf32>
    %33 = vector.shape_cast %32 : vector<128xf32> to vector<1x128xf32>
    %cst_29 = arith.constant dense<0.000000e+00> : vector<1x128xf32>
    %34 = tpu.matmul %33, %0, %cst_29 {dimension_numbers = #tpu.dot_dimension_numbers<[1], [0], [0], [1], [0, 0, 1, 1], [], []>} : vector<1x128xf32>, vector<128x128xf32>, vector<1x128xf32> -> vector<1x128xf32>
    %35 = arith.mulf %30, %30 : vector<1x128xf32>
    %36 = arith.subf %34, %35 : vector<1x128xf32>
    %37 = vector.broadcast %30 : vector<1x128xf32> to vector<32x128xf32>
    %38 = arith.subf %27, %37 : vector<32x128xf32>
    %cst_30 = arith.constant 9.99999974E-6 : f32
    %39 = vector.broadcast %cst_30 : f32 to vector<1x128xf32>
    %40 = arith.addf %36, %39 : vector<1x128xf32>
    %41 = math.rsqrt %40 : vector<1x128xf32>
    %42 = vector.broadcast %41 : vector<1x128xf32> to vector<32x128xf32>
    %43 = arith.mulf %38, %42 : vector<32x128xf32>
    %44 = vector.broadcast %24 : vector<1x128xf32> to vector<32x128xf32>
    %45 = arith.mulf %43, %44 : vector<32x128xf32>
    %46 = vector.broadcast %25 : vector<1x128xf32> to vector<32x128xf32>
    %47 = arith.addf %45, %46 : vector<32x128xf32>
    %cst_31 = arith.constant 0.000000e+00 : f32
    %48 = vector.broadcast %cst_31 : f32 to vector<32x128xf32>
    %49 = arith.maximumf %47, %48 : vector<32x128xf32>
    %cst_32 = arith.constant 0.000000e+00 : f32
    %50 = vector.broadcast %cst_32 : f32 to vector<2x32x128xf32>
    %c0_33 = arith.constant 0 : index
    %c0_34 = arith.constant 0 : index
    %c0_35 = arith.constant 0 : index
    %51 = vector.load %arg6[%c0_33, %c0_34, %c0_35] : memref<2x32x128xf32, #tpu.memory_space<vmem>>, vector<2x32x128xf32>
    tpu.vector_store %arg6[%c0_33, %c0_34, %c0_35], %50 {strides = array<i32>} : memref<2x32x128xf32, #tpu.memory_space<vmem>>, vector<2x32x128xf32>,
    %52 = vector.shape_cast %49 : vector<32x128xf32> to vector<2x16x128xf32>
    %c0_36 = arith.constant 0 : index
    %c8 = arith.constant 8 : index
    %c0_37 = arith.constant 0 : index
    %53 = vector.load %arg6[%c0_36, %c8, %c0_37] : memref<2x32x128xf32, #tpu.memory_space<vmem>>, vector<2x16x128xf32>
    tpu.vector_store %arg6[%c0_36, %c8, %c0_37], %52 {strides = array<i32>} : memref<2x32x128xf32, #tpu.memory_space<vmem>>, vector<2x16x128xf32>,
    %cst_38 = arith.constant 0.000000e+00 : f32
    %54 = vector.broadcast %cst_38 : f32 to vector<32x128xf32>
    %c0_39 = arith.constant 0 : index
    %c7 = arith.constant 7 : index
    %c0_40 = arith.constant 0 : index
    %55 = vector.load %arg6[%c0_39, %c7, %c0_40] : memref<2x32x128xf32, #tpu.memory_space<vmem>>, vector<2x16x128xf32>
    %56 = vector.shape_cast %55 : vector<2x16x128xf32> to vector<32x128xf32>
    %57 = arith.truncf %56 : vector<32x128xf32> to vector<32x128xbf16>
    %c0_41 = arith.constant 0 : index
    %c0_42 = arith.constant 0 : index
    %c0_43 = arith.constant 0 : index
    %58 = vector.load %arg2[%c0_41, %c0_42, %c0_43] : memref<3x128x128xbf16, #tpu.memory_space<vmem>>, vector<1x128x128xbf16>
    %59 = vector.shape_cast %58 : vector<1x128x128xbf16> to vector<128x128xbf16>
    %cst_44 = arith.constant dense<0.000000e+00> : vector<32x128xf32>
    %60 = tpu.matmul %57, %59, %cst_44 {dimension_numbers = #tpu.dot_dimension_numbers<[1], [0], [0], [1], [0, 0, 1, 1], [], []>} : vector<32x128xbf16>, vector<128x128xbf16>, vector<32x128xf32> -> vector<32x128xf32>
    %61 = arith.addf %54, %60 : vector<32x128xf32>
    %c0_45 = arith.constant 0 : index
    %c8_46 = arith.constant 8 : index
    %c0_47 = arith.constant 0 : index
    %62 = vector.load %arg6[%c0_45, %c8_46, %c0_47] : memref<2x32x128xf32, #tpu.memory_space<vmem>>, vector<2x16x128xf32>
    %63 = vector.shape_cast %62 : vector<2x16x128xf32> to vector<32x128xf32>
    %64 = arith.truncf %63 : vector<32x128xf32> to vector<32x128xbf16>
    %c1_48 = arith.constant 1 : index
    %c0_49 = arith.constant 0 : index
    %c0_50 = arith.constant 0 : index
    %65 = vector.load %arg2[%c1_48, %c0_49, %c0_50] : memref<3x128x128xbf16, #tpu.memory_space<vmem>>, vector<1x128x128xbf16>
    %66 = vector.shape_cast %65 : vector<1x128x128xbf16> to vector<128x128xbf16>
    %cst_51 = arith.constant dense<0.000000e+00> : vector<32x128xf32>
    %67 = tpu.matmul %64, %66, %cst_51 {dimension_numbers = #tpu.dot_dimension_numbers<[1], [0], [0], [1], [0, 0, 1, 1], [], []>} : vector<32x128xbf16>, vector<128x128xbf16>, vector<32x128xf32> -> vector<32x128xf32>
    %68 = arith.addf %61, %67 : vector<32x128xf32>
    %c0_52 = arith.constant 0 : index
    %c9 = arith.constant 9 : index
    %c0_53 = arith.constant 0 : index
    %69 = vector.load %arg6[%c0_52, %c9, %c0_53] : memref<2x32x128xf32, #tpu.memory_space<vmem>>, vector<2x16x128xf32>
    %70 = vector.shape_cast %69 : vector<2x16x128xf32> to vector<32x128xf32>
    %71 = arith.truncf %70 : vector<32x128xf32> to vector<32x128xbf16>
    %c2_54 = arith.constant 2 : index
    %c0_55 = arith.constant 0 : index
    %c0_56 = arith.constant 0 : index
    %72 = vector.load %arg2[%c2_54, %c0_55, %c0_56] : memref<3x128x128xbf16, #tpu.memory_space<vmem>>, vector<1x128x128xbf16>
    %73 = vector.shape_cast %72 : vector<1x128x128xbf16> to vector<128x128xbf16>
    %cst_57 = arith.constant dense<0.000000e+00> : vector<32x128xf32>
    %74 = tpu.matmul %71, %73, %cst_57 {dimension_numbers = #tpu.dot_dimension_numbers<[1], [0], [0], [1], [0, 0, 1, 1], [], []>} : vector<32x128xbf16>, vector<128x128xbf16>, vector<32x128xf32> -> vector<32x128xf32>
    %75 = arith.addf %68, %74 : vector<32x128xf32>
    %c3 = arith.constant 3 : index
    %c0_58 = arith.constant 0 : index
    %76 = vector.load %arg3[%c3, %c0_58] : memref<6x128xf32, #tpu.memory_space<vmem>>, vector<1x128xf32>
    %c4 = arith.constant 4 : index
    %c0_59 = arith.constant 0 : index
    %77 = vector.load %arg3[%c4, %c0_59] : memref<6x128xf32, #tpu.memory_space<vmem>>, vector<1x128xf32>
    %c5 = arith.constant 5 : index
    %c0_60 = arith.constant 0 : index
    %78 = vector.load %arg3[%c5, %c0_60] : memref<6x128xf32, #tpu.memory_space<vmem>>, vector<1x128xf32>
    %79 = vector.broadcast %76 : vector<1x128xf32> to vector<32x128xf32>
    %80 = arith.addf %75, %79 : vector<32x128xf32>
    %cst_61 = arith.constant dense<0.000000e+00> : vector<128xf32>
    %81 = vector.multi_reduction <add>, %80, %cst_61 [0] : vector<32x128xf32> to vector<128xf32>
    %82 = vector.shape_cast %81 : vector<128xf32> to vector<1x128xf32>
    %cst_62 = arith.constant dense<0.000000e+00> : vector<1x128xf32>
    %83 = tpu.matmul %82, %0, %cst_62 {dimension_numbers = #tpu.dot_dimension_numbers<[1], [0], [0], [1], [0, 0, 1, 1], [], []>} : vector<1x128xf32>, vector<128x128xf32>, vector<1x128xf32> -> vector<1x128xf32>
    %84 = arith.mulf %80, %80 : vector<32x128xf32>
    %cst_63 = arith.constant dense<0.000000e+00> : vector<128xf32>
    %85 = vector.multi_reduction <add>, %84, %cst_63 [0] : vector<32x128xf32> to vector<128xf32>
    %86 = vector.shape_cast %85 : vector<128xf32> to vector<1x128xf32>
    %cst_64 = arith.constant dense<0.000000e+00> : vector<1x128xf32>
    %87 = tpu.matmul %86, %0, %cst_64 {dimension_numbers = #tpu.dot_dimension_numbers<[1], [0], [0], [1], [0, 0, 1, 1], [], []>} : vector<1x128xf32>, vector<128x128xf32>, vector<1x128xf32> -> vector<1x128xf32>
    %88 = arith.mulf %83, %83 : vector<1x128xf32>
    %89 = arith.subf %87, %88 : vector<1x128xf32>
    %90 = vector.broadcast %83 : vector<1x128xf32> to vector<32x128xf32>
    %91 = arith.subf %80, %90 : vector<32x128xf32>
    %cst_65 = arith.constant 9.99999974E-6 : f32
    %92 = vector.broadcast %cst_65 : f32 to vector<1x128xf32>
    %93 = arith.addf %89, %92 : vector<1x128xf32>
    %94 = math.rsqrt %93 : vector<1x128xf32>
    %95 = vector.broadcast %94 : vector<1x128xf32> to vector<32x128xf32>
    %96 = arith.mulf %91, %95 : vector<32x128xf32>
    %97 = vector.broadcast %77 : vector<1x128xf32> to vector<32x128xf32>
    %98 = arith.mulf %96, %97 : vector<32x128xf32>
    %99 = vector.broadcast %78 : vector<1x128xf32> to vector<32x128xf32>
    %100 = arith.addf %98, %99 : vector<32x128xf32>
    %cst_66 = arith.constant 0.000000e+00 : f32
    %101 = vector.broadcast %cst_66 : f32 to vector<32x128xf32>
    %102 = arith.maximumf %100, %101 : vector<32x128xf32>
    %c0_67 = arith.constant 0 : index
    %c0_68 = arith.constant 0 : index
    %103 = vector.load %arg5[%c0_67, %c0_68] : memref<32x128xf32, #tpu.memory_space<vmem>>, vector<32x128xf32>
    tpu.vector_store %arg5[%c0_67, %c0_68], %102 {strides = array<i32>} : memref<32x128xf32, #tpu.memory_space<vmem>>, vector<32x128xf32>,
    return
  }
}

</mosaic_0001>

<bundles_post_ra>
// kernel: tile.33
= control target key start
LH: loop header
LB: loop body
LE: loop exit
PB: predicated region body
PF: predicated region fallthrough
CT: control target
= control target key end

     0   :  { %s28_s0 = inlined_call_operand.vmem [shape: f32[8], index: 0, kind: input, shape index: {}]   ;;  %s29_s1 = inlined_call_operand.vmem [shape: f32[16,8], index: 1, kind: output, shape index: {}]  }
   0x1   :  { %v4_v0 = vld [vmem:[%s28_s0] ss:$0 sm:$0xff] }
   0x2   :  { %5 = vst [vmem:[%s29_s1] sm:$0xff] %v4_v0  ;;  %8 = vst [vmem:[%s29_s1 + $0x8] sm:$0xff] %v4_v0 }

// kernel: tile.54
= control target key start
LH: loop header
LB: loop body
LE: loop exit
PB: predicated region body
PF: predicated region fallthrough
CT: control target
= control target key end

     0   :  { %s133_s10 = smov 120   ;;  %s134_s11 = smov 104   ;;  %vm3_vm0 = vcmask 64512   ;;  %vm9_vm1 = vcmask 1048512   ;;  %vm15_vm2 = vcmask 982912   ;;  %vm21_vm3 = vcmask 917312   ;;  %s209_s0 = inlined_call_operand.vmem [shape: f32[16,8], index: 0, kind: input, shape index: {}]   ;;  %s210_s1 = inlined_call_operand.vmem [shape: f32[1,128], index: 1, kind: output, shape index: {}]  }
   0x1   :  { %v103_v0 = vld [vmem:[%s209_s0 + $0xf] sm:$0x1]   ;;  %v105_v1 = vld [vmem:[%s209_s0 + $0xd] sm:$0x1]   ;;  %v104_v2 = vld [vmem:[%s209_s0 + $0xe] sm:$0x1]  }
   0x2   :  { %7 = vrot.lane.b32.xlu0 %v103_v0, %s133_s10  ;;  %19 = vrot.lane.b32.xlu1 %v105_v1, %s134_s11  ;;  %v106_v3 = vld [vmem:[%s209_s0 + $0xc] sm:$0x1]   ;;  %s135_s16 = smov 112   ;;  %s136_s17 = smov 96   ;;  %v107_v4 = vld [vmem:[%s209_s0 + $0xb] sm:$0x1]  }
   0x3   :  { %v108_v5 = vld [vmem:[%s209_s0 + $0xa] sm:$0x1]   ;;  %v2_v6 = vld [vmem:[%s209_s0] sm:$0x1]   ;;  %s137_s24 = smov 88   ;;  %s138_s25 = smov 80  }
   0x4   :  { %4 = vst.msk [vmem:[#allocation0] sm:$0x1] %vm3_vm0, %v2_v6   ;;  %v109_v7 = vld [vmem:[%s209_s0 + $0x9] sm:$0x1]   ;;  %v110_v8 = vld [vmem:[%s209_s0 + $0x8] sm:$0x1]  }
   0x5   :  { %s139_s30 = smov 72   ;;  %s140_s2 = smov 64   ;;  %v111_v9 = vld [vmem:[%s209_s0 + $0x7] sm:$0x1]   ;;  %v112_v10 = vld [vmem:[%s209_s0 + $0x6] sm:$0x1]  }
   0x6   :  { %13 = vrot.lane.b32.xlu0 %v104_v2, %s135_s16  ;;  %25 = vrot.lane.b32.xlu1 %v106_v3, %s136_s17  ;;  %s141_s7 = smov 56   ;;  %s142_s8 = smov 48   ;;  %v113_v11 = vld [vmem:[%s209_s0 + $0x5] sm:$0x1]   ;;  %v114_v12 = vld [vmem:[%s209_s0 + $0x4] sm:$0x1]  }
   0x7   :  { %s143_s13 = smov 40   ;;  %s144_s14 = smov 32   ;;  %v115_v13 = vld [vmem:[%s209_s0 + $0x3] sm:$0x1]   ;;  %v116_v14 = vld [vmem:[%s209_s0 + $0x2] sm:$0x1]  }
   0x8   :  { %s145_s19 = smov 24   ;;  %s146_s20 = smov 16   ;;  %v117_v15 = vld [vmem:[%s209_s0 + $0x1] sm:$0x1]   ;;  %vm27_vm4 = vcmask 851712   ;;  %vm33_vm5 = vcmask 786112  }
   0x9   :  { %s147_s0 = smov 8   ;;  %vm39_vm6 = vcmask 720512   ;;  %vm45_vm7 = vcmask 654912   ;;  %vm51_vm8 = vcmask 589312   ;;  %vm57_vm9 = vcmask 523712  }
   0xa   :  { %31 = vrot.lane.b32.xlu0 %v107_v4, %s137_s24  ;;  %37 = vrot.lane.b32.xlu1 %v108_v5, %s138_s25  ;;  %vm63_vm10 = vcmask 458112   ;;  %vm69_vm11 = vcmask 392512   ;;  %vm75_vm12 = vcmask 326912   ;;  %vm81_vm13 = vcmask 261312  }
   0xb   :  { %vm87_vm14 = vcmask 195712   ;;  %vm93_vm15 = vcmask 130112  }
   0xe   :  { %43 = vrot.lane.b32.xlu0 %v109_v7, %s139_s30  ;;  %49 = vrot.lane.b32.xlu1 %v110_v8, %s140_s2 }
  0x12   :  { %55 = vrot.lane.b32.xlu0 %v111_v9, %s141_s7  ;;  %61 = vrot.lane.b32.xlu1 %v112_v10, %s142_s8 }
  0x16   :  { %67 = vrot.lane.b32.xlu0 %v113_v11, %s143_s13  ;;  %73 = vrot.lane.b32.xlu1 %v114_v12, %s144_s14 }
  0x1a   :  { %79 = vrot.lane.b32.xlu0 %v115_v13, %s145_s19  ;;  %85 = vrot.lane.b32.xlu1 %v116_v14, %s146_s20 }
  0x1e   :  { %91 = vrot.lane.b32.xlu0 %v117_v15, %s147_s0 }
  0x74   :  { %v8_v16 = vpop.permute.xlu0 %7   ;;  %v20_v17 = vpop.permute.xlu1 %19  }
  0x75   :  { %10 = vst.msk [vmem:[#allocation0] sm:$0x1] %vm9_vm1, %v8_v16  }
  0x78   :  { %v14_v18 = vpop.permute.xlu0 %13   ;;  %v26_v19 = vpop.permute.xlu1 %25  }
  0x79   :  { %16 = vst.msk [vmem:[#allocation0] sm:$0x1] %vm15_vm2, %v14_v18  }
  0x7a   :  { %22 = vst.msk [vmem:[#allocation0] sm:$0x1] %vm21_vm3, %v20_v17  }
  0x7b   :  { %28 = vst.msk [vmem:[#allocation0] sm:$0x1] %vm27_vm4, %v26_v19  }
  0x7c   :  { %v32_v20 = vpop.permute.xlu0 %31   ;;  %v38_v21 = vpop.permute.xlu1 %37  }
  0x7d   :  { %34 = vst.msk [vmem:[#allocation0] sm:$0x1] %vm33_vm5, %v32_v20  }
  0x7e   :  { %40 = vst.msk [vmem:[#allocation0] sm:$0x1] %vm39_vm6, %v38_v21  }
  0x80   :  { %v44_v22 = vpop.permute.xlu0 %43   ;;  %v50_v23 = vpop.permute.xlu1 %49  }
  0x81   :  { %46 = vst.msk [vmem:[#allocation0] sm:$0x1] %vm45_vm7, %v44_v22  }
  0x82   :  { %52 = vst.msk [vmem:[#allocation0] sm:$0x1] %vm51_vm8, %v50_v23  }
  0x84   :  { %v56_v24 = vpop.permute.xlu0 %55   ;;  %v62_v25 = vpop.permute.xlu1 %61  }
  0x85   :  { %58 = vst.msk [vmem:[#allocation0] sm:$0x1] %vm57_vm9, %v56_v24  }
  0x86   :  { %64 = vst.msk [vmem:[#allocation0] sm:$0x1] %vm63_vm10, %v62_v25  }
  0x88   :  { %v68_v26 = vpop.permute.xlu0 %67   ;;  %v74_v27 = vpop.permute.xlu1 %73  }
  0x89   :  { %70 = vst.msk [vmem:[#allocation0] sm:$0x1] %vm69_vm11, %v68_v26  }
  0x8a   :  { %76 = vst.msk [vmem:[#allocation0] sm:$0x1] %vm75_vm12, %v74_v27  }
  0x8c   :  { %v80_v28 = vpop.permute.xlu0 %79   ;;  %v86_v29 = vpop.permute.xlu1 %85  }
  0x8d   :  { %82 = vst.msk [vmem:[#allocation0] sm:$0x1] %vm81_vm13, %v80_v28  }
  0x8e   :  { %88 = vst.msk [vmem:[#allocation0] sm:$0x1] %vm87_vm14, %v86_v29  }
  0x90   :  { %v92_v30 = vpop.permute.xlu0 %91  }
  0x91   :  { %94 = vst.msk [vmem:[#allocation0] sm:$0x1] %vm93_vm15, %v92_v30  }
  0x98   :  { %v99_v31 = vld [vmem:[#allocation0] sm:$0x1] }
  0x99   :  { %102 = vst [vmem:[%s210_s1] sm:$0x1] %v99_v31 }

// kernel: conv_block_forward.1
= control target key start
LH: loop header
LB: loop body
LE: loop exit
PB: predicated region body
PF: predicated region fallthrough
CT: control target
= control target key end

     0   :  { %vm90_vm0 = vcmask 523264   ;;  %v1622_v30 = vmov 0.0   ;;  %vm1623_vm1 = vmmov 0   ;;  %s2084_s1 = inlined_call_operand.vmem [shape: bf16[3,64,128], index: 1, kind: input, shape index: {}]   ;;  %s2085_s0 = inlined_call_operand.vmem [shape: f32[2,18,64], index: 0, kind: input, shape index: {}]   ;;  %s2086_s4 = inlined_call_operand.vmem [shape: f32[128,128], index: 4, kind: input, shape index: {}]   ;;  %s2087_s3 = inlined_call_operand.vmem [shape: f32[6,128], index: 3, kind: input, shape index: {}]   ;;  %s2088_s2 = inlined_call_operand.vmem [shape: bf16[3,128,128], index: 2, kind: input, shape index: {}]   ;;  %s2089_s5 = inlined_call_operand.vmem [shape: f32[32,128], index: 5, kind: output, shape index: {}]  }
   0x1   :  { %v1582_v0 = vld [vmem:[%s2084_s1 + $0x38] sm:$0xff]   ;;  %v1584_v2 = vld [vmem:[%s2084_s1 + $0x30] sm:$0xff]   ;;  %v1586_v4 = vld [vmem:[%s2084_s1 + $0x28] sm:$0xff]   ;;  %536 = vst [vmem:[#allocation2] sm:$0xff] %v1622_v30 }
   0x2   :  { %v1583_v1 = vld [vmem:[%s2084_s1 + $0x18] sm:$0xff]   ;;  %1344 = vmatprep.subr.bf16.mxu0 %v1582_v0  ;;  %v1585_v3 = vld [vmem:[%s2084_s1 + $0x10] sm:$0xff]   ;;  %v1587_v5 = vld [vmem:[%s2084_s1 + $0x8] sm:$0xff]   ;;  %539 = vst [vmem:[#allocation2 + $0x18] sm:$0xff] %v1622_v30 }
   0x3   :  { %1356 = vmatprep.subr.bf16.mxu1 %v1583_v1  ;;  %1345 = vmatpush3.bf16.msra.mxu0 %v1582_v0  ;;  %v1588_v6 = vld [vmem:[%s2084_s1 + $0x20] sm:$0xff]   ;;  %v52_v8 = vld [vmem:[%s2085_s0 + $0x9] sm:$0xff]  ;;  %v39_v16 = vld [vmem:[%s2085_s0 + $0x18] sm:$0xff]  ;;  %540 = vst [vmem:[#allocation2 + $0x20] sm:$0xff] %v1622_v30 }
   0x4   :  { %1357 = vmatpush3.bf16.msra.mxu1 %v1583_v1  ;;  %1346 = vmatprep.subr.bf16.mxu0 %v1584_v2  ;;  %v51_v7 = vld [vmem:[%s2085_s0 + $0x1] sm:$0xff]  ;;  %v53_v13 = vld [vmem:[%s2085_s0 + $0x19] sm:$0xff]  ;;  %v226_v22 = vld [vmem:[%s2085_s0 + $0xa] sm:$0xff]  ;;  %543 = vst [vmem:[#allocation2 + $0x38] sm:$0xff] %v1622_v30 }
   0x5   :  { %1358 = vmatprep.subr.bf16.mxu1 %v1585_v3  ;;  %v37_v9 = vld [vmem:[%s2085_s0] sm:$0xff]  ;;  %v55_v11 = vpack.c.bf16 %v52_v8, %v51_v7  ;;  %v38_v12 = vld [vmem:[%s2085_s0 + $0x8] sm:$0xff]  ;;  %v1590_v18 = vld [vmem:[%s2084_s1 + $0x58] sm:$0xff]  }
   0x6   :  { %v1589_v10 = vld [vmem:[%s2084_s1] sm:$0xff]   ;;  %v41_v14 = vpack.c.bf16 %v38_v12, %v37_v9  ;;  %v1591_v23 = vld [vmem:[%s2084_s1 + $0x50] sm:$0xff]   ;;  %v1592_v25 = vld [vmem:[%s2084_s1 + $0x48] sm:$0xff]  }
   0x7   :  { %1347 = vmatpush3.bf16.msra.mxu0 %v1584_v2  ;;  %v54_v15 = vld [vmem:[%s2085_s0 + $0x21] sm:$0xff]  ;;  %1352 = vmatprep.mubr.msk.bf16.mxu0 %vm90_vm0, %v55_v11  ;;  %v1740_v31 = vld [vmem:[%s2086_s4 + $0x78] sm:$0xff]  ;;  %v1750_v32 = vld [vmem:[%s2086_s4 + $0x70] sm:$0xff] }
   0x8   :  { %1359 = vmatpush3.bf16.msra.mxu1 %v1585_v3  ;;  %1348 = vmatprep.subr.bf16.mxu0 %v1586_v4  ;;  %v40_v17 = vld [vmem:[%s2085_s0 + $0x20] sm:$0xff]  ;;  %v56_v19 = vpack.c.bf16 %v54_v15, %v53_v13  ;;  %v1758_v33 = vld [vmem:[%s2086_s4 + $0x68] sm:$0xff]  ;;  %v1776_v35 = vld [vmem:[%s2086_s4 + $0x58] sm:$0xff] }
   0x9   :  { %1360 = vmatprep.subr.bf16.mxu1 %v1587_v5  ;;  %1364 = vmatprep.mubr.msk.bf16.mxu1 %vm90_vm0, %v41_v14  ;;  %v225_v20 = vld [vmem:[%s2085_s0 + $0x2] sm:$0xff]  ;;  %v42_v21 = vpack.c.bf16 %v40_v17, %v39_v16  ;;  %v227_v27 = vld [vmem:[%s2085_s0 + $0x1a] sm:$0xff]  ;;  %v1785_v36 = vld [vmem:[%s2086_s4 + $0x50] sm:$0xff] }
   0xa   :  { %v229_v24 = vpack.c.bf16 %v226_v22, %v225_v20  ;;  %v1593_v26 = vld [vmem:[%s2084_s1 + $0x40] sm:$0xff]   ;;  %v1794_v37 = vld [vmem:[%s2086_s4 + $0x48] sm:$0xff]  ;;  %v1812_v39 = vld [vmem:[%s2086_s4 + $0x38] sm:$0xff] }
   0xb   :  { %1349 = vmatpush3.bf16.msra.mxu0 %v1586_v4  ;;  %v228_v28 = vld [vmem:[%s2085_s0 + $0x22] sm:$0xff]  ;;  %v1821_v40 = vld [vmem:[%s2086_s4 + $0x30] sm:$0xff]  ;;  %v1845_v43 = vld [vmem:[%s2086_s4 + $0x18] sm:$0xff] }
   0xc   :  { %1361 = vmatpush3.bf16.msra.mxu1 %v1587_v5  ;;  %1350 = vmatprep.subr.bf16.mxu0 %v1588_v6  ;;  %v230_v29 = vpack.c.bf16 %v228_v28, %v227_v27  ;;  %v1767_v34 = vld [vmem:[%s2086_s4 + $0x60] sm:$0xff]  ;;  %v1828_v41 = vld [vmem:[%s2086_s4 + $0x28] sm:$0xff]  ;;  %v1854_v44 = vld [vmem:[%s2086_s4 + $0x10] sm:$0xff] }
   0xd   :  { %1362 = vmatprep.subr.bf16.mxu1 %v1589_v10  ;;  %v1803_v38 = vld [vmem:[%s2086_s4 + $0x40] sm:$0xff]  ;;  %v1863_v45 = vld [vmem:[%s2086_s4 + $0x8] sm:$0xff] }
   0xe   :  { %v1836_v42 = vld [vmem:[%s2086_s4 + $0x20] sm:$0xff] }
   0xf   :  { %1351 = vmatpush3.bf16.msra.mxu0 %v1588_v6  ;;  %v1872_v46 = vld [vmem:[%s2086_s4] sm:$0xff] }
  0x10   :  { %1363 = vmatpush3.bf16.msra.mxu1 %v1589_v10  ;;  %1368 = vmatprep.subr.bf16.mxu0 %v1590_v18  ;;  %v1166_v0 = vld [vmem:[%s2087_s3] ss:$0 sm:$0xff] }
  0x11   :  { %1380 = vmatprep.subr.mxu1 %v1622_v30 }
  0x12   :  { %1353 = vmatmul.mubr.msk.bf16.vlgmr.msra.gmra.mxu0 %vm90_vm0, %v56_v19 }
  0x13   :  { %1365 = vmatmul.mubr.msk.bf16.vlgmr.msra.gmra.mxu1 %vm90_vm0, %v42_v21  ;;  %1369 = vmatpush3.bf16.msra.mxu0 %v1590_v18 }
  0x14   :  { %1370 = vmatprep.subr.bf16.mxu0 %v1591_v23  ;;  %1376 = vmatprep.mubr.msk.bf16.mxu0 %vm90_vm0, %v229_v24 }
  0x15   :  { %1381 = vmatpush3.msra.mxu1 %v1740_v31  ;;  %1412 = vmatprep.mubr.msk.f32.mxu1 %vm1623_vm1, %v1622_v30 }
  0x16   :  { %1382 = vmatprep.subr.mxu1 %v1622_v30 }
  0x17   :  { %1371 = vmatpush3.bf16.msra.mxu0 %v1591_v23  ;;  %1383 = vmatpush3.msra.mxu1 %v1750_v32 }
  0x18   :  { %1372 = vmatprep.subr.bf16.mxu0 %v1592_v25  ;;  %1384 = vmatprep.subr.mxu1 %v1622_v30 }
  0x19   :  { %1385 = vmatpush3.msra.mxu1 %v1758_v33 }
  0x1a   :  { %1386 = vmatprep.subr.mxu1 %v1622_v30 }
  0x1b   :  { %1373 = vmatpush3.bf16.msra.mxu0 %v1592_v25  ;;  %1387 = vmatpush3.msra.mxu1 %v1767_v34 }
  0x1c   :  { %1374 = vmatprep.subr.bf16.mxu0 %v1593_v26  ;;  %1388 = vmatprep.subr.mxu1 %v1622_v30 }
  0x1d   :  { %1389 = vmatpush3.msra.mxu1 %v1776_v35 }
  0x1e   :  { %1390 = vmatprep.subr.mxu1 %v1622_v30 }
  0x1f   :  { %1375 = vmatpush3.bf16.msra.mxu0 %v1593_v26  ;;  %1391 = vmatpush3.msra.mxu1 %v1785_v36 }
  0x20   :  { %1415 = vmatprep.subr.mxu0 %v1622_v30  ;;  %1392 = vmatprep.subr.mxu1 %v1622_v30 }
  0x21   :  { %1393 = vmatpush3.msra.mxu1 %v1794_v37 }
  0x22   :  { %1377 = vmatmul.mubr.msk.bf16.vlgmr.msra.gmra.mxu0 %vm90_vm0, %v230_v29  ;;  %1394 = vmatprep.subr.mxu1 %v1622_v30 }
  0x23   :  { %1416 = vmatpush3.msra.mxu0 %v1740_v31  ;;  %1395 = vmatpush3.msra.mxu1 %v1803_v38 }
  0x24   :  { %1417 = vmatprep.subr.mxu0 %v1622_v30  ;;  %1396 = vmatprep.subr.mxu1 %v1622_v30 }
  0x25   :  { %1418 = vmatpush3.msra.mxu0 %v1750_v32  ;;  %1397 = vmatpush3.msra.mxu1 %v1812_v39 }
  0x26   :  { %1419 = vmatprep.subr.mxu0 %v1622_v30  ;;  %1398 = vmatprep.subr.mxu1 %v1622_v30 }
  0x27   :  { %1420 = vmatpush3.msra.mxu0 %v1758_v33  ;;  %1399 = vmatpush3.msra.mxu1 %v1821_v40 }
  0x28   :  { %1421 = vmatprep.subr.mxu0 %v1622_v30  ;;  %1400 = vmatprep.subr.mxu1 %v1622_v30 }
  0x29   :  { %1422 = vmatpush3.msra.mxu0 %v1767_v34  ;;  %1401 = vmatpush3.msra.mxu1 %v1828_v41 }
  0x2a   :  { %1423 = vmatprep.subr.mxu0 %v1622_v30  ;;  %1402 = vmatprep.subr.mxu1 %v1622_v30 }
  0x2b   :  { %1424 = vmatpush3.msra.mxu0 %v1776_v35  ;;  %1403 = vmatpush3.msra.mxu1 %v1836_v42 }
  0x2c   :  { %1425 = vmatprep.subr.mxu0 %v1622_v30  ;;  %1404 = vmatprep.subr.mxu1 %v1622_v30 }
  0x2d   :  { %1426 = vmatpush3.msra.mxu0 %v1785_v36  ;;  %1405 = vmatpush3.msra.mxu1 %v1845_v43 }
  0x2e   :  { %1427 = vmatprep.subr.mxu0 %v1622_v30  ;;  %1406 = vmatprep.subr.mxu1 %v1622_v30 }
  0x2f   :  { %1428 = vmatpush3.msra.mxu0 %v1794_v37  ;;  %1407 = vmatpush3.msra.mxu1 %v1854_v44 }
  0x30   :  { %1429 = vmatprep.subr.mxu0 %v1622_v30  ;;  %1408 = vmatprep.subr.mxu1 %v1622_v30 }
  0x31   :  { %1430 = vmatpush3.msra.mxu0 %v1803_v38  ;;  %1409 = vmatpush3.msra.mxu1 %v1863_v45 }
  0x32   :  { %1431 = vmatprep.subr.mxu0 %v1622_v30  ;;  %1410 = vmatprep.subr.mxu1 %v1622_v30 }
  0x33   :  { %1432 = vmatpush3.msra.mxu0 %v1812_v39  ;;  %1411 = vmatpush3.msra.mxu1 %v1872_v46 }
  0x34   :  { %1433 = vmatprep.subr.mxu0 %v1622_v30  ;;  %1447 = vmatprep.mubr.msk.f32.mxu0 %vm1623_vm1, %v1622_v30 }
  0x35   :  { %1434 = vmatpush3.msra.mxu0 %v1821_v40 }
  0x36   :  { %1435 = vmatprep.subr.mxu0 %v1622_v30 }
  0x37   :  { %1436 = vmatpush3.msra.mxu0 %v1828_v41 }
  0x38   :  { %1437 = vmatprep.subr.mxu0 %v1622_v30 }
  0x39   :  { %1438 = vmatpush3.msra.mxu0 %v1836_v42 }
  0x3a   :  { %1439 = vmatprep.subr.mxu0 %v1622_v30 }
  0x3b   :  { %1440 = vmatpush3.msra.mxu0 %v1845_v43 }
  0x3c   :  { %1441 = vmatprep.subr.mxu0 %v1622_v30 }
  0x3d   :  { %1442 = vmatpush3.msra.mxu0 %v1854_v44 }
  0x3e   :  { %1443 = vmatprep.subr.mxu0 %v1622_v30 }
  0x3f   :  { %1444 = vmatpush3.msra.mxu0 %v1863_v45 }
  0x40   :  { %1445 = vmatprep.subr.mxu0 %v1622_v30 }
  0x41   :  { %1446 = vmatpush3.msra.mxu0 %v1872_v46 }
  0xd2   :  { %v1354_v47 = vpop.f32.mrf.mxu0 }
  0xd3   :  { %v1366_v48 = vpop.f32.mrf.mxu1 }
  0xd4   :  { %v131_v49 = vpop.f32.mrf.mxu0  ;;  %v219_v58 = vadd.f32 %v1366_v48, %v1354_v47  ;;  %v1594_v47 = vld [vmem:[%s2088_s2 + $0x78] sm:$0xff]   ;;  %v1596_v48 = vld [vmem:[%s2088_s2 + $0x70] sm:$0xff]  }
  0xd5   :  { %v210_v50 = vpop.f32.mrf.mxu1  ;;  %1450 = vmatprep.subr.bf16.mxu1 %v1594_v47 }
  0xd6   :  { %v1355_v51 = vpop.f32.mrf.mxu0  ;;  %v211_v55 = vadd.f32 %v210_v50, %v131_v49  ;;  %v1598_v49 = vld [vmem:[%s2088_s2 + $0x68] sm:$0xff]   ;;  %v1595_v50 = vld [vmem:[%s2088_s2 + $0x38] sm:$0xff]  }
  0xd7   :  { %v1367_v52 = vpop.f32.mrf.mxu1  ;;  %1470 = vmatprep.subr.bf16.mxu0 %v1595_v50 }
  0xd8   :  { %v134_v53 = vpop.f32.mrf.mxu0  ;;  %v222_v61 = vadd.f32 %v1367_v52, %v1355_v51  ;;  %v1600_v51 = vld [vmem:[%s2088_s2 + $0x60] sm:$0xff]   ;;  %v1597_v52 = vld [vmem:[%s2088_s2 + $0x30] sm:$0xff]  }
  0xd9   :  { %v213_v56 = vpop.f32.mrf.mxu1 }
  0xda   :  { %v214_v62 = vadd.f32 %v213_v56, %v134_v53  ;;  %v1602_v53 = vld [vmem:[%s2088_s2 + $0x58] sm:$0xff]   ;;  %v1601_v56 = vld [vmem:[%s2088_s2 + $0x20] sm:$0xff]  }
  0xe2   :  { %v1378_v54 = vpop.f32.mrf.mxu0 }
  0xe3   :  { %v321_v63 = vadd.f32 %v1378_v54, %v219_v58  ;;  %v1599_v54 = vld [vmem:[%s2088_s2 + $0x28] sm:$0xff]   ;;  %v1603_v58 = vld [vmem:[%s2088_s2 + $0x18] sm:$0xff]  }
  0xe4   :  { %v304_v57 = vpop.f32.mrf.mxu0 }
  0xe5   :  { %v319_v59 = vadd.f32 %v304_v57, %v211_v55  ;;  %v1889_v5 = vadd.f32 %v1166_v0, %v321_v63  ;;  %v1604_v55 = vld [vmem:[%s2088_s2 + $0x50] sm:$0xff]   ;;  %v1606_v57 = vld [vmem:[%s2088_s2 + $0x48] sm:$0xff]   ;;  %v1609_v63 = vld [vmem:[%s2088_s2] sm:$0xff]  }
  0xe6   :  { %v1379_v60 = vpop.f32.mrf.mxu0 }
  0xe7   :  { %v1887_v2 = vadd.f32 %v1166_v0, %v319_v59  ;;  %v322_v3 = vadd.f32 %v1379_v60, %v222_v61  ;;  %v415_v11 = vmul.f32 %v1889_v5, %v1889_v5  ;;  %v1608_v59 = vld [vmem:[%s2088_s2 + $0x40] sm:$0xff]   ;;  %v1605_v60 = vld [vmem:[%s2088_s2 + $0x10] sm:$0xff]   ;;  %v1607_v61 = vld [vmem:[%s2088_s2 + $0x8] sm:$0xff]  }
  0xe8   :  { %v307_v1 = vpop.f32.mrf.mxu0 }
  0xe9   :  { %v320_v4 = vadd.f32 %v307_v1, %v214_v62  ;;  %v413_v7 = vmul.f32 %v1887_v2, %v1887_v2  ;;  %v1895_v8 = vadd.f32 %v1166_v0, %v322_v3  ;;  %v1610_v62 = vld [vmem:[%s2088_s2 + $0xb8] sm:$0xff]  }
  0xeb   :  { %v1891_v6 = vadd.f32 %v1166_v0, %v320_v4  ;;  %v416_v14 = vmul.f32 %v1895_v8, %v1895_v8 }
  0xed   :  { %v334_v9 = vadd.f32 %v1891_v6, %v1887_v2  ;;  %v414_v10 = vmul.f32 %v1891_v6, %v1891_v6 }
  0xef   :  { %v335_v12 = vadd.f32 %v334_v9, %v1889_v5  ;;  %v417_v13 = vadd.f32 %v414_v10, %v413_v7  ;;  %v498_v10 = vlaneseq }
  0xf1   :  { %v336_v15 = vadd.f32 %v335_v12, %v1895_v8  ;;  %v418_v16 = vadd.f32 %v417_v13, %v415_v11  ;;  %v499_v12 = vshrl.u32 %v498_v10, 7 }
  0xf3   :  { %v337_v17 = vrot.slane %v336_v15, 4  ;;  %v419_v18 = vadd.f32 %v418_v16, %v416_v14  ;;  %v1959_v13 = vsub.s32 0, %v499_v12 }
  0xf5   :  { %v338_v19 = vadd.f32 %v337_v17, %v336_v15  ;;  %v420_v20 = vrot.slane %v419_v18, 4 }
  0xf7   :  { %v339_v21 = vrot.slane %v338_v19, 2  ;;  %v421_v22 = vadd.f32 %v420_v20, %v419_v18 }
  0xf9   :  { %v340_v23 = vadd.f32 %v339_v21, %v338_v19  ;;  %v422_v24 = vrot.slane %v421_v22, 2  ;;  %v1167_v21 = vld [vmem:[%s2087_s3 + $0x1] ss:$0 sm:$0xff] }
  0xfb   :  { %v341_v25 = vrot.slane %v340_v23, 1  ;;  %v423_v26 = vadd.f32 %v422_v24, %v421_v22 }
  0xfd   :  { %v342_v27 = vadd.f32 %v341_v25, %v340_v23  ;;  %v424_v28 = vrot.slane %v423_v26, 1 }
  0xff   :  { %1413 = vmatmul.mubr.f32.vlgmr.msra.gmra.mxu1 %v342_v27  ;;  %v425_v29 = vadd.f32 %v424_v28, %v423_v26 }
 0x100   :  { %1451 = vmatpush3.bf16.msra.mxu1 %v1594_v47 }
 0x101   :  { %1448 = vmatmul.mubr.f32.vlgmr.msra.gmra.mxu0 %v425_v29  ;;  %1452 = vmatprep.subr.bf16.mxu1 %v1596_v48 }
 0x102   :  { %1471 = vmatpush3.bf16.msra.mxu0 %v1595_v50 }
 0x103   :  { %1472 = vmatprep.subr.bf16.mxu0 %v1597_v52 }
 0x104   :  { %1453 = vmatpush3.bf16.msra.mxu1 %v1596_v48 }
 0x105   :  { %1454 = vmatprep.subr.bf16.mxu1 %v1598_v49 }
 0x106   :  { %1473 = vmatpush3.bf16.msra.mxu0 %v1597_v52 }
 0x107   :  { %1474 = vmatprep.subr.bf16.mxu0 %v1599_v54 }
 0x108   :  { %1455 = vmatpush3.bf16.msra.mxu1 %v1598_v49 }
 0x109   :  { %1456 = vmatprep.subr.bf16.mxu1 %v1600_v51 }
 0x10a   :  { %1475 = vmatpush3.bf16.msra.mxu0 %v1599_v54  ;;  %v1611_v54 = vld [vmem:[%s2088_s2 + $0xb0] sm:$0xff]  }
 0x10b   :  { %1476 = vmatprep.subr.bf16.mxu0 %v1601_v56 }
 0x10c   :  { %1457 = vmatpush3.bf16.msra.mxu1 %v1600_v51 }
 0x10d   :  { %1458 = vmatprep.subr.bf16.mxu1 %v1602_v53 }
 0x10e   :  { %1477 = vmatpush3.bf16.msra.mxu0 %v1601_v56 }
 0x10f   :  { %1478 = vmatprep.subr.bf16.mxu0 %v1603_v58 }
 0x110   :  { %1459 = vmatpush3.bf16.msra.mxu1 %v1602_v53 }
 0x111   :  { %1460 = vmatprep.subr.bf16.mxu1 %v1604_v55 }
 0x112   :  { %1479 = vmatpush3.bf16.msra.mxu0 %v1603_v58 }
 0x113   :  { %1480 = vmatprep.subr.bf16.mxu0 %v1605_v60 }
 0x114   :  { %1461 = vmatpush3.bf16.msra.mxu1 %v1604_v55  ;;  %v1612_v55 = vld [vmem:[%s2088_s2 + $0xa8] sm:$0xff]  }
 0x115   :  { %1462 = vmatprep.subr.bf16.mxu1 %v1606_v57 }
 0x116   :  { %1481 = vmatpush3.bf16.msra.mxu0 %v1605_v60 }
 0x117   :  { %1482 = vmatprep.subr.bf16.mxu0 %v1607_v61 }
 0x118   :  { %1463 = vmatpush3.bf16.msra.mxu1 %v1606_v57 }
 0x119   :  { %1464 = vmatprep.subr.bf16.mxu1 %v1608_v59 }
 0x11a   :  { %1483 = vmatpush3.bf16.msra.mxu0 %v1607_v61 }
 0x11b   :  { %1484 = vmatprep.subr.bf16.mxu0 %v1609_v63 }
 0x11c   :  { %1465 = vmatpush3.bf16.msra.mxu1 %v1608_v59 }
 0x11d   :  { %1490 = vmatprep.subr.bf16.mxu1 %v1610_v62 }
 0x11e   :  { %1485 = vmatpush3.bf16.msra.mxu0 %v1609_v63 }
 0x11f   :  { %1510 = vmatprep.subr.mxu0 %v1622_v30 }
 0x1bf   :  { %v409_v0 = vpop.f32.mrf.mxu1 }
 0x1c0   :  { %v496_v1 = vmul.f32 %v409_v0, %v409_v0  ;;  %v501_v14 = vrot.slane %v409_v0, %v1959_v13 }
 0x1c1   :  { %v1414_v3 = vpop.f32.mrf.mxu1  ;;  %v492_v4 = vpop.f32.mrf.mxu0 }
 0x1c2   :  { %v497_v7 = vsub.f32 %v492_v4, %v496_v1  ;;  %v502_v16 = vsub.f32 %v1887_v2, %v501_v14  ;;  %v503_v17 = vsub.f32 %v1891_v6, %v501_v14  ;;  %v504_v18 = vsub.f32 %v1889_v5, %v501_v14  ;;  %v1168_v2 = vld [vmem:[%s2087_s3 + $0x2] ss:$0 sm:$0xff]  ;;  %v1614_v3 = vld [vmem:[%s2088_s2 + $0x98] sm:$0xff]   ;;  %v1615_v4 = vld [vmem:[%s2088_s2 + $0x90] sm:$0xff]  }
 0x1c3   :  { %v1449_v9 = vpop.f32.mrf.mxu0  ;;  %v505_v19 = vsub.f32 %v1895_v8, %v501_v14 }
 0x1c4   :  { %v506_v11 = vadd.f32 1e-05, %v497_v7  ;;  %v1616_v7 = vld [vmem:[%s2088_s2 + $0x88] sm:$0xff]   ;;  %v1617_v9 = vld [vmem:[%s2088_s2 + $0x80] sm:$0xff]  }
 0x1c6   :  { %1618 = vrsqrt.f32 %v506_v11 }
 0x1d3   :  { %v1619_v15 = vpop.eup %1618 }
 0x1d4   :  { %v511_v20 = vrot.slane %v1619_v15, %v1959_v13 }
 0x1d6   :  { %v512_v22 = vmul.f32 %v511_v20, %v502_v16  ;;  %v513_v23 = vmul.f32 %v511_v20, %v503_v17  ;;  %v514_v24 = vmul.f32 %v511_v20, %v504_v18  ;;  %v515_v25 = vmul.f32 %v511_v20, %v505_v19 }
 0x1d8   :  { %v520_v26 = vmul.f32 %v1167_v21, %v512_v22  ;;  %v521_v6 = vmul.f32 %v1167_v21, %v513_v23  ;;  %v522_v27 = vmul.f32 %v1167_v21, %v514_v24  ;;  %v523_v5 = vmul.f32 %v1167_v21, %v515_v25 }
 0x1da   :  { %v528_v28 = vadd.f32 %v1168_v2, %v520_v26  ;;  %v529_v8 = vadd.f32 %v1168_v2, %v521_v6  ;;  %v530_v29 = vadd.f32 %v1168_v2, %v522_v27  ;;  %v531_v47 = vadd.f32 %v1168_v2, %v523_v5 }
 0x1dc   :  { %v532_v48 = vmax.f32 %v528_v28, 0.0  ;;  %v533_v49 = vmax.f32 %v529_v8, 0.0  ;;  %v534_v50 = vmax.f32 %v530_v29, 0.0  ;;  %v535_v51 = vmax.f32 %v531_v47, 0.0 }
 0x1de   :  { %544 = vst [vmem:[#allocation2 + $0x8] sm:$0xff] %v532_v48  ;;  %545 = vst [vmem:[#allocation2 + $0x10] sm:$0xff] %v533_v49  ;;  %v574_v52 = vpack.c.bf16 %v533_v49, %v532_v48  ;;  %v575_v53 = vpack.c.bf16 %v535_v51, %v534_v50 }
 0x1df   :  { %546 = vst [vmem:[#allocation2 + $0x28] sm:$0xff] %v534_v50  ;;  %547 = vst [vmem:[#allocation2 + $0x30] sm:$0xff] %v535_v51 }
 0x1e0   :  { %1466 = vmatprep.mubr.bf16.mxu1 %v574_v52 }
 0x1e1   :  { %1467 = vmatmul.mubr.bf16.vlgmr.msra.gmra.mxu1 %v575_v53 }
 0x1e2   :  { %1491 = vmatpush3.bf16.msra.mxu1 %v1610_v62  ;;  %v1613_v62 = vld [vmem:[%s2088_s2 + $0xa0] sm:$0xff]  }
 0x1e3   :  { %1492 = vmatprep.subr.bf16.mxu1 %v1611_v54 }
 0x1e5   :  { %v548_v56 = vld [vmem:[#allocation2 + $0x7] sm:$0xff]  ;;  %v549_v57 = vld [vmem:[#allocation2 + $0xf] sm:$0xff] }
 0x1e6   :  { %v550_v58 = vld [vmem:[#allocation2 + $0x27] sm:$0xff]  ;;  %v552_v59 = vpack.c.bf16 %v549_v57, %v548_v56  ;;  %v551_v60 = vld [vmem:[#allocation2 + $0x2f] sm:$0xff]  ;;  %1493 = vmatpush3.bf16.msra.mxu1 %v1611_v54 }
 0x1e7   :  { %v787_v61 = vld [vmem:[#allocation2 + $0x9] sm:$0xff]  ;;  %v788_v63 = vld [vmem:[#allocation2 + $0x11] sm:$0xff]  ;;  %v553_v0 = vpack.c.bf16 %v551_v60, %v550_v58  ;;  %1494 = vmatprep.subr.bf16.mxu1 %v1612_v55 }
 0x1e8   :  { %v791_v1 = vpack.c.bf16 %v788_v63, %v787_v61  ;;  %1486 = vmatprep.mubr.bf16.mxu0 %v552_v59  ;;  %v789_v10 = vld [vmem:[#allocation2 + $0x29] sm:$0xff]  ;;  %v790_v11 = vld [vmem:[#allocation2 + $0x31] sm:$0xff] }
 0x1e9   :  { %1487 = vmatmul.mubr.bf16.vlgmr.msra.gmra.mxu0 %v553_v0  ;;  %v792_v12 = vpack.c.bf16 %v790_v11, %v789_v10  ;;  %v1226_v11 = vld [vmem:[%s2087_s3 + $0x4] ss:$0 sm:$0xff] }
 0x1ea   :  { %1506 = vmatprep.mubr.bf16.mxu1 %v791_v1  ;;  %1495 = vmatpush3.bf16.msra.mxu1 %v1612_v55 }
 0x1eb   :  { %1511 = vmatpush3.msra.mxu0 %v1740_v31  ;;  %1496 = vmatprep.subr.bf16.mxu1 %v1613_v62 }
 0x1ec   :  { %1512 = vmatprep.subr.mxu0 %v1622_v30  ;;  %1542 = vmatprep.mubr.msk.f32.mxu0 %vm1623_vm1, %v1622_v30 }
 0x1ed   :  { %1513 = vmatpush3.msra.mxu0 %v1750_v32 }
 0x1ee   :  { %1514 = vmatprep.subr.mxu0 %v1622_v30  ;;  %1497 = vmatpush3.bf16.msra.mxu1 %v1613_v62 }
 0x1ef   :  { %1515 = vmatpush3.msra.mxu0 %v1758_v33  ;;  %1498 = vmatprep.subr.bf16.mxu1 %v1614_v3 }
 0x1f0   :  { %1516 = vmatprep.subr.mxu0 %v1622_v30 }
 0x1f1   :  { %1517 = vmatpush3.msra.mxu0 %v1767_v34 }
 0x1f2   :  { %1518 = vmatprep.subr.mxu0 %v1622_v30  ;;  %1499 = vmatpush3.bf16.msra.mxu1 %v1614_v3 }
 0x1f3   :  { %1519 = vmatpush3.msra.mxu0 %v1776_v35  ;;  %1500 = vmatprep.subr.bf16.mxu1 %v1615_v4 }
 0x1f4   :  { %1520 = vmatprep.subr.mxu0 %v1622_v30 }
 0x1f5   :  { %1521 = vmatpush3.msra.mxu0 %v1785_v36 }
 0x1f6   :  { %1522 = vmatprep.subr.mxu0 %v1622_v30  ;;  %1501 = vmatpush3.bf16.msra.mxu1 %v1615_v4 }
 0x1f7   :  { %1523 = vmatpush3.msra.mxu0 %v1794_v37  ;;  %1502 = vmatprep.subr.bf16.mxu1 %v1616_v7 }
 0x1f8   :  { %1524 = vmatprep.subr.mxu0 %v1622_v30 }
 0x1f9   :  { %1525 = vmatpush3.msra.mxu0 %v1803_v38 }
 0x1fa   :  { %1526 = vmatprep.subr.mxu0 %v1622_v30  ;;  %1503 = vmatpush3.bf16.msra.mxu1 %v1616_v7 }
 0x1fb   :  { %1527 = vmatpush3.msra.mxu0 %v1812_v39  ;;  %1504 = vmatprep.subr.bf16.mxu1 %v1617_v9 }
 0x1fc   :  { %1528 = vmatprep.subr.mxu0 %v1622_v30 }
 0x1fd   :  { %1529 = vmatpush3.msra.mxu0 %v1821_v40 }
 0x1fe   :  { %1530 = vmatprep.subr.mxu0 %v1622_v30  ;;  %1505 = vmatpush3.bf16.msra.mxu1 %v1617_v9 }
 0x1ff   :  { %1531 = vmatpush3.msra.mxu0 %v1828_v41  ;;  %1545 = vmatprep.subr.mxu1 %v1622_v30 }
 0x200   :  { %1532 = vmatprep.subr.mxu0 %v1622_v30 }
 0x201   :  { %1533 = vmatpush3.msra.mxu0 %v1836_v42  ;;  %1507 = vmatmul.mubr.bf16.vlgmr.msra.gmra.mxu1 %v792_v12 }
 0x202   :  { %1534 = vmatprep.subr.mxu0 %v1622_v30  ;;  %1546 = vmatpush3.msra.mxu1 %v1740_v31 }
 0x203   :  { %1535 = vmatpush3.msra.mxu0 %v1845_v43  ;;  %1547 = vmatprep.subr.mxu1 %v1622_v30 }
 0x204   :  { %1536 = vmatprep.subr.mxu0 %v1622_v30  ;;  %1548 = vmatpush3.msra.mxu1 %v1750_v32 }
 0x205   :  { %1537 = vmatpush3.msra.mxu0 %v1854_v44  ;;  %1549 = vmatprep.subr.mxu1 %v1622_v30 }
 0x206   :  { %1538 = vmatprep.subr.mxu0 %v1622_v30  ;;  %1550 = vmatpush3.msra.mxu1 %v1758_v33 }
 0x207   :  { %1539 = vmatpush3.msra.mxu0 %v1863_v45  ;;  %1551 = vmatprep.subr.mxu1 %v1622_v30 }
 0x208   :  { %1540 = vmatprep.subr.mxu0 %v1622_v30  ;;  %1552 = vmatpush3.msra.mxu1 %v1767_v34 }
 0x209   :  { %1541 = vmatpush3.msra.mxu0 %v1872_v46  ;;  %1553 = vmatprep.subr.mxu1 %v1622_v30 }
 0x20a   :  { %1577 = vmatprep.mubr.msk.f32.mxu1 %vm1623_vm1, %v1622_v30  ;;  %1554 = vmatpush3.msra.mxu1 %v1776_v35 }
 0x20b   :  { %1555 = vmatprep.subr.mxu1 %v1622_v30 }
 0x20c   :  { %1556 = vmatpush3.msra.mxu1 %v1785_v36 }
 0x20d   :  { %1557 = vmatprep.subr.mxu1 %v1622_v30 }
 0x20e   :  { %1558 = vmatpush3.msra.mxu1 %v1794_v37 }
 0x20f   :  { %1559 = vmatprep.subr.mxu1 %v1622_v30 }
 0x210   :  { %1560 = vmatpush3.msra.mxu1 %v1803_v38 }
 0x211   :  { %1561 = vmatprep.subr.mxu1 %v1622_v30 }
 0x212   :  { %1562 = vmatpush3.msra.mxu1 %v1812_v39 }
 0x213   :  { %1563 = vmatprep.subr.mxu1 %v1622_v30 }
 0x214   :  { %1564 = vmatpush3.msra.mxu1 %v1821_v40 }
 0x215   :  { %1565 = vmatprep.subr.mxu1 %v1622_v30 }
 0x216   :  { %1566 = vmatpush3.msra.mxu1 %v1828_v41 }
 0x217   :  { %1567 = vmatprep.subr.mxu1 %v1622_v30 }
 0x218   :  { %1568 = vmatpush3.msra.mxu1 %v1836_v42 }
 0x219   :  { %1569 = vmatprep.subr.mxu1 %v1622_v30 }
 0x21a   :  { %1570 = vmatpush3.msra.mxu1 %v1845_v43 }
 0x21b   :  { %1571 = vmatprep.subr.mxu1 %v1622_v30 }
 0x21c   :  { %1572 = vmatpush3.msra.mxu1 %v1854_v44 }
 0x21d   :  { %1573 = vmatprep.subr.mxu1 %v1622_v30 }
 0x21e   :  { %1574 = vmatpush3.msra.mxu1 %v1863_v45 }
 0x21f   :  { %1575 = vmatprep.subr.mxu1 %v1622_v30  ;;  %v1225_v30 = vld [vmem:[%s2087_s3 + $0x3] ss:$0 sm:$0xff] }
 0x220   :  { %1576 = vmatpush3.msra.mxu1 %v1872_v46 }
 0x2a1   :  { %v1468_v31 = vpop.f32.mrf.mxu1 }
 0x2a3   :  { %v675_v33 = vpop.f32.mrf.mxu1 }
 0x2a5   :  { %v1469_v35 = vpop.f32.mrf.mxu1 }
 0x2a7   :  { %v678_v37 = vpop.f32.mrf.mxu1 }
 0x2a9   :  { %v1488_v32 = vpop.f32.mrf.mxu0 }
 0x2aa   :  { %v781_v42 = vadd.f32 %v1488_v32, %v1468_v31 }
 0x2ab   :  { %v772_v34 = vpop.f32.mrf.mxu0 }
 0x2ac   :  { %v773_v39 = vadd.f32 %v772_v34, %v675_v33  ;;  %v1227_v34 = vld [vmem:[%s2087_s3 + $0x5] ss:$0 sm:$0xff] }
 0x2ad   :  { %v1489_v36 = vpop.f32.mrf.mxu0 }
 0x2ae   :  { %v784_v14 = vadd.f32 %v1489_v36, %v1469_v35 }
 0x2af   :  { %v775_v40 = vpop.f32.mrf.mxu0 }
 0x2b0   :  { %v776_v45 = vadd.f32 %v775_v40, %v678_v37 }
 0x2c1   :  { %v1508_v38 = vpop.f32.mrf.mxu1 }
 0x2c2   :  { %v909_v15 = vadd.f32 %v1508_v38, %v781_v42 }
 0x2c3   :  { %v892_v41 = vpop.f32.mrf.mxu1 }
 0x2c4   :  { %v907_v43 = vadd.f32 %v892_v41, %v773_v39  ;;  %v920_v19 = vadd.f32 %v1225_v30, %v909_v15 }
 0x2c5   :  { %v1509_v44 = vpop.f32.mrf.mxu1 }
 0x2c6   :  { %v918_v16 = vadd.f32 %v1225_v30, %v907_v43  ;;  %v910_v17 = vadd.f32 %v1509_v44, %v784_v14  ;;  %v1003_v25 = vmul.f32 %v920_v19, %v920_v19 }
 0x2c7   :  { %v895_v46 = vpop.f32.mrf.mxu1 }
 0x2c8   :  { %v908_v18 = vadd.f32 %v895_v46, %v776_v45  ;;  %v1001_v21 = vmul.f32 %v918_v16, %v918_v16  ;;  %v921_v22 = vadd.f32 %v1225_v30, %v910_v17 }
 0x2ca   :  { %v919_v20 = vadd.f32 %v1225_v30, %v908_v18  ;;  %v1004_v6 = vmul.f32 %v921_v22, %v921_v22 }
 0x2cc   :  { %v922_v23 = vadd.f32 %v919_v20, %v918_v16  ;;  %v1002_v24 = vmul.f32 %v919_v20, %v919_v20 }
 0x2ce   :  { %v923_v2 = vadd.f32 %v922_v23, %v920_v19  ;;  %v1005_v26 = vadd.f32 %v1002_v24, %v1001_v21 }
 0x2d0   :  { %v924_v27 = vadd.f32 %v923_v2, %v921_v22  ;;  %v1006_v5 = vadd.f32 %v1005_v26, %v1003_v25 }
 0x2d2   :  { %v925_v28 = vrot.slane %v924_v27, 4  ;;  %v1007_v8 = vadd.f32 %v1006_v5, %v1004_v6 }
 0x2d4   :  { %v926_v29 = vadd.f32 %v925_v28, %v924_v27  ;;  %v1008_v47 = vrot.slane %v1007_v8, 4 }
 0x2d6   :  { %v927_v48 = vrot.slane %v926_v29, 2  ;;  %v1009_v49 = vadd.f32 %v1008_v47, %v1007_v8 }
 0x2d8   :  { %v928_v50 = vadd.f32 %v927_v48, %v926_v29  ;;  %v1010_v51 = vrot.slane %v1009_v49, 2 }
 0x2da   :  { %v929_v52 = vrot.slane %v928_v50, 1  ;;  %v1011_v53 = vadd.f32 %v1010_v51, %v1009_v49 }
 0x2dc   :  { %v930_v54 = vadd.f32 %v929_v52, %v928_v50  ;;  %v1012_v55 = vrot.slane %v1011_v53, 1 }
 0x2de   :  { %1543 = vmatmul.mubr.f32.vlgmr.msra.gmra.mxu0 %v930_v54  ;;  %v1013_v56 = vadd.f32 %v1012_v55, %v1011_v53 }
 0x2e0   :  { %1578 = vmatmul.mubr.f32.vlgmr.msra.gmra.mxu1 %v1013_v56 }
 0x39e   :  { %v997_v57 = vpop.f32.mrf.mxu0 }
 0x39f   :  { %v1084_v58 = vmul.f32 %v997_v57, %v997_v57  ;;  %v1089_v1 = vrot.slane %v997_v57, %v1959_v13 }
 0x3a0   :  { %v1544_v59 = vpop.f32.mrf.mxu0  ;;  %v1080_v60 = vpop.f32.mrf.mxu1 }
 0x3a1   :  { %v1085_v61 = vsub.f32 %v1080_v60, %v1084_v58  ;;  %v1090_v3 = vsub.f32 %v918_v16, %v1089_v1  ;;  %v1091_v4 = vsub.f32 %v919_v20, %v1089_v1  ;;  %v1092_v7 = vsub.f32 %v920_v19, %v1089_v1 }
 0x3a2   :  { %v1579_v63 = vpop.f32.mrf.mxu1  ;;  %v1093_v9 = vsub.f32 %v921_v22, %v1089_v1 }
 0x3a3   :  { %v1094_v0 = vadd.f32 1e-05, %v1085_v61 }
 0x3a5   :  { %1620 = vrsqrt.f32 %v1094_v0 }
 0x3b2   :  { %v1621_v62 = vpop.eup %1620 }
 0x3b3   :  { %v1099_v10 = vrot.slane %v1621_v62, %v1959_v13 }
 0x3b5   :  { %v1100_v12 = vmul.f32 %v1099_v10, %v1090_v3  ;;  %v1101_v31 = vmul.f32 %v1099_v10, %v1091_v4  ;;  %v1102_v32 = vmul.f32 %v1099_v10, %v1092_v7  ;;  %v1103_v33 = vmul.f32 %v1099_v10, %v1093_v9 }
 0x3b7   :  { %v1108_v35 = vmul.f32 %v1226_v11, %v1100_v12  ;;  %v1109_v36 = vmul.f32 %v1226_v11, %v1101_v31  ;;  %v1110_v37 = vmul.f32 %v1226_v11, %v1102_v32  ;;  %v1111_v38 = vmul.f32 %v1226_v11, %v1103_v33 }
 0x3b9   :  { %v1116_v39 = vadd.f32 %v1227_v34, %v1108_v35  ;;  %v1117_v40 = vadd.f32 %v1227_v34, %v1109_v36  ;;  %v1118_v41 = vadd.f32 %v1227_v34, %v1110_v37  ;;  %v1119_v13 = vadd.f32 %v1227_v34, %v1111_v38 }
 0x3bb   :  { %v1120_v42 = vmax.f32 %v1116_v39, 0.0  ;;  %v1121_v43 = vmax.f32 %v1117_v40, 0.0  ;;  %v1122_v44 = vmax.f32 %v1118_v41, 0.0  ;;  %v1123_v14 = vmax.f32 %v1119_v13, 0.0 }
 0x3bd   :  { %1124 = vst [vmem:[%s2089_s5] sm:$0xff] %v1120_v42  ;;  %1125 = vst [vmem:[%s2089_s5 + $0x8] sm:$0xff] %v1121_v43 }
 0x3be   :  { %1126 = vst [vmem:[%s2089_s5 + $0x10] sm:$0xff] %v1122_v44  ;;  %1127 = vst [vmem:[%s2089_s5 + $0x18] sm:$0xff] %v1123_v14 }

</bundles_post_ra>
